<compile_context>
chip_gen: v7x
topology: tpu7x:2x2x1
jax: 0.10.0
libtpu: 0.0.40
codegen_flags: <defaults>
</compile_context>

<pallas_src>
import functools
import math

import jax
import jax.numpy as jnp
from jax.experimental import pallas as pl
from jax.experimental.pallas import tpu as pltpu


def _gmm_packed_kernel(x_ref, w_ref, b_ref, psum_ref, *,
                       n_packed, tile_p, pack_g, num_k):
    """One grid step over a (tile_p, G*D) packed block of x."""
    i = pl.program_id(0)

    x = x_ref[...].astype(jnp.float32)                 # (tile_p, G*D), lane-dense
    xx = jnp.concatenate([x * x, x], axis=-1)          # (tile_p, 2*G*D)

    # comp[p, k*G + g] = log N(x_{row g of pack p} | mu_k, sigma_k) + log_mix_k
    comp = (jnp.dot(xx, w_ref[...], preferred_element_type=jnp.float32)
            + b_ref[...])                              # (tile_p, K*G)

    # Per-logical-row max over the K components (static lane slices, no reshape).
    gm = comp[:, 0:pack_g]
    for c in range(1, num_k):
        gm = jnp.maximum(gm, comp[:, c * pack_g:(c + 1) * pack_g])

    # exp once on the full lane-dense array, then group-sum over the K slices.
    p = jnp.exp(comp - jnp.concatenate([gm] * num_k, axis=-1))
    gs = p[:, 0:pack_g]
    for c in range(1, num_k):
        gs = gs + p[:, c * pack_g:(c + 1) * pack_g]

    logp = gm + jnp.log(gs)                            # (tile_p, G) log-probs

    last = pl.num_programs(0) - 1

    @pl.when(i < last)                                 # interior tiles: unmasked fast path
    def _():
        psum_ref[0, 0] = jnp.sum(logp)

    @pl.when(i == last)                                # last tile: mask ragged packed rows
    def _():
        rows = jax.lax.broadcasted_iota(jnp.int32, logp.shape, 0) + i * tile_p
        psum_ref[0, 0] = jnp.sum(jnp.where(rows < n_packed, logp, 0.0))


def gmm_diagonal_nll(x, mus, sigmas, logits, *, tile_bytes=4 << 20):
    """Pallas-backed equivalent of GmmDiagonal.forward(x)."""
    N, D = x.shape
    K = mus.shape[0]
    f32 = jnp.float32

    # ---- tiny per-component constants (built once, f32) ----
    mus32 = mus.astype(f32)
    sig32 = sigmas.astype(f32)
    inv_var = 1.0 / (sig32 * sig32)                            # (K, D)
    w1 = jnp.transpose(-0.5 * inv_var)                         # (D, K)
    w2 = jnp.transpose(mus32 * inv_var)                        # (D, K)
    log_mix = jax.nn.log_softmax(logits.astype(f32).reshape(-1))
    bias = (log_mix
            - 0.5 * jnp.sum(mus32 * mus32 * inv_var, axis=-1)
            - jnp.sum(jnp.log(sig32), axis=-1)
            - 0.5 * D * math.log(2.0 * math.pi))               # (K,)

    # ---- lane packing factor ----
    G = 128 // D if (D <= 128 and 128 % D == 0) else 1
    r = N % G
    n_main = N - r
    total = jnp.zeros((), f32)

    if n_main > 0:
        n_packed = n_main // G
        # Free metadata reshape when N % G == 0; otherwise the slice copies once.
        xp = x[:n_main].reshape(n_packed, G * D)

        # Block-diagonal packed weights with k-major columns (col = k*G + g).
        eye_g = jnp.eye(G, dtype=f32)
        wb1 = jnp.einsum('dk,gh->gdkh', w1, eye_g).reshape(G * D, K * G)
        wb2 = jnp.einsum('dk,gh->gdkh', w2, eye_g).reshape(G * D, K * G)
        w_packed = jnp.concatenate([wb1, wb2], axis=0)         # (2*G*D, K*G)
        b_packed = jnp.repeat(bias, G).reshape(1, K * G)       # (1, K*G)

        # ---- tile sizing: ~4 MiB of x per buffer, sublane multiple of 8 ----
        bytes_per_packed_row = G * D * x.dtype.itemsize
        tile_p = max(8, tile_bytes // bytes_per_packed_row)
        tile_p = min(tile_p, ((n_packed + 7) // 8) * 8)
        tile_p = max(8, (tile_p // 8) * 8)
        # Keep >= a few grid steps so v7x's two TensorCores both get work.
        if n_packed >= 32 and pl.cdiv(n_packed, tile_p) < 4:
            tile_p = max(8, ((pl.cdiv(n_packed, 4) + 7) // 8) * 8)
        num_tiles = pl.cdiv(n_packed, tile_p)

        kernel = functools.partial(_gmm_packed_kernel, n_packed=n_packed,
                                   tile_p=tile_p, pack_g=G, num_k=K)

        cost = pl.CostEstimate(
            flops=int(4 * n_main * D * K + 4 * n_main * K),
            transcendentals=int(n_main * K + n_main),
            bytes_accessed=int(xp.size * xp.dtype.itemsize
                               + w_packed.size * 4 + b_packed.size * 4
                               + num_tiles * 4),
        )

        partial_sums = pl.pallas_call(
            kernel,
            out_shape=jax.ShapeDtypeStruct((num_tiles, 1), f32),
            grid=(num_tiles,),
            in_specs=[
                pl.BlockSpec((tile_p, G * D), lambda i: (i, 0)),      # x: streamed
                pl.BlockSpec((2 * G * D, K * G), lambda i: (0, 0)),   # W: VMEM-resident
                pl.BlockSpec((1, K * G), lambda i: (0, 0)),           # b: VMEM-resident
            ],
            out_specs=pl.BlockSpec((1, 1), lambda i: (i, 0),
                                   memory_space=pltpu.MemorySpace.SMEM),
            compiler_params=pltpu.CompilerParams(
                dimension_semantics=("parallel",)),
            cost_estimate=cost,
        )(xp, w_packed, b_packed)

        total = total + jnp.sum(partial_sums)

    if r > 0:
        # Exact epilogue for the <= G-1 trailing rows that don't fit the packing.
        xt = x[n_main:].astype(f32)
        comp_t = (xt * xt) @ w1 + xt @ w2 + bias[None, :]
        total = total + jnp.sum(jax.scipy.special.logsumexp(comp_t, axis=-1))

    return -total / N


def _reference_nll(x, mus, sigmas, logits):
    # Plain-JAX reference of the same math (correctness check only).
    log_mix = jax.nn.log_softmax(logits)                               # (K,)
    z = (x[:, None, :] - mus[None, :, :]) / sigmas[None, :, :]         # (N, K, D)
    comp = jnp.sum(-0.5 * z * z - jnp.log(sigmas)[None, :, :], axis=-1) \
        - 0.5 * x.shape[-1] * math.log(2.0 * math.pi)                  # (N, K)
    logp = jax.scipy.special.logsumexp(comp + log_mix[None, :], axis=-1)
    return -jnp.mean(logp)


if __name__ == "__main__":
    # GmmDiagonal(num_components=K, num_dims=D).  N=200 exercises the packed
    # kernel path (12 packed rows, ragged last tile) AND the 8-row JAX epilogue.
    N, K, D = 200, 4, 8
    key = jax.random.PRNGKey(0)
    kx, km, ks = jax.random.split(key, 3)

    x = jax.random.normal(kx, (N, D), dtype=jnp.float32)
    mus = jax.random.uniform(km, (K, D), minval=-1.0, maxval=1.0, dtype=jnp.float32)
    sigmas = jax.random.uniform(ks, (K, D), minval=0.5, maxval=1.5, dtype=jnp.float32)
    logits = jnp.zeros((K,), dtype=jnp.float32)

    nll = jax.block_until_ready(gmm_diagonal_nll(x, mus, sigmas, logits))
    ref = _reference_nll(x, mus, sigmas, logits)
    assert jnp.allclose(nll, ref, rtol=5e-3, atol=5e-3), (nll, ref)

    # Also cover the no-tail path (N a multiple of the pack factor).
    x2 = jax.random.normal(kx, (256, D), dtype=jnp.float32)
    nll2 = jax.block_until_ready(gmm_diagonal_nll(x2, mus, sigmas, logits))
    ref2 = _reference_nll(x2, mus, sigmas, logits)
    assert jnp.allclose(nll2, ref2, rtol=5e-3, atol=5e-3), (nll2, ref2)

    print("KERNEL_OK")
</pallas_src>

<mosaic_0001>
module attributes {stable_mosaic.version = 11 : i64} {
  func.func @_gmm_packed_kernel(%arg0: i32, %arg1: memref<16x128xf32, #tpu.memory_space<vmem>>, %arg2: memref<256x64xf32, #tpu.memory_space<vmem>>, %arg3: memref<1x64xf32, #tpu.memory_space<vmem>>, %arg4: memref<1x1xf32, #tpu.memory_space<smem>>) attributes {dimension_semantics = [#tpu.dimension_semantics<parallel>], iteration_bounds = array<i64: 1>, scalar_prefetch = 0 : i64, scratch_operands = 0 : i64, tpu.core_type = #tpu.core_type<tc>, window_params = [{transform_indices = @transform_0, window_bounds = array<i64: 16, 128>}, {pipeline_mode = #tpu.pipeline_mode<synchronous>, transform_indices = @transform_1, window_bounds = array<i64: 256, 64>}, {pipeline_mode = #tpu.pipeline_mode<synchronous>, transform_indices = @transform_2, window_bounds = array<i64: 1, 64>}, {transform_indices = @transform_3, window_bounds = array<i64: 1, 1>}]} {
    %c0 = arith.constant 0 : index
    %c0_0 = arith.constant 0 : index
    %0 = vector.load %arg1[%c0, %c0_0] : memref<16x128xf32, #tpu.memory_space<vmem>>, vector<16x128xf32>
    %1 = arith.mulf %0, %0 : vector<16x128xf32>
    %2 = tpu.concatenate %1, %0 in 1 : vector<16x128xf32>, vector<16x128xf32> -> vector<16x256xf32>
    %c0_1 = arith.constant 0 : index
    %c0_2 = arith.constant 0 : index
    %3 = vector.load %arg2[%c0_1, %c0_2] : memref<256x64xf32, #tpu.memory_space<vmem>>, vector<256x64xf32>
    %cst = arith.constant dense<0.000000e+00> : vector<16x64xf32>
    %4 = tpu.matmul %2, %3, %cst {dimension_numbers = #tpu.dot_dimension_numbers<[1], [0], [0], [1], [0, 0, 1, 1], [], []>} : vector<16x256xf32>, vector<256x64xf32>, vector<16x64xf32> -> vector<16x64xf32>
    %c0_3 = arith.constant 0 : index
    %c0_4 = arith.constant 0 : index
    %5 = vector.load %arg3[%c0_3, %c0_4] : memref<1x64xf32, #tpu.memory_space<vmem>>, vector<1x64xf32>
    %6 = vector.broadcast %5 : vector<1x64xf32> to vector<16x64xf32>
    %7 = arith.addf %4, %6 : vector<16x64xf32>
    %8 = vector.extract_strided_slice %7 {offsets = [0, 0], sizes = [16, 16], strides = [1, 1]} : vector<16x64xf32> to vector<16x16xf32>
    %9 = vector.extract_strided_slice %7 {offsets = [0, 16], sizes = [16, 16], strides = [1, 1]} : vector<16x64xf32> to vector<16x16xf32>
    %10 = arith.maximumf %8, %9 : vector<16x16xf32>
    %11 = vector.extract_strided_slice %7 {offsets = [0, 32], sizes = [16, 16], strides = [1, 1]} : vector<16x64xf32> to vector<16x16xf32>
    %12 = arith.maximumf %10, %11 : vector<16x16xf32>
    %13 = vector.extract_strided_slice %7 {offsets = [0, 48], sizes = [16, 16], strides = [1, 1]} : vector<16x64xf32> to vector<16x16xf32>
    %14 = arith.maximumf %12, %13 : vector<16x16xf32>
    %15 = tpu.concatenate %14, %14, %14, %14 in 1 : vector<16x16xf32>, vector<16x16xf32>, vector<16x16xf32>, vector<16x16xf32> -> vector<16x64xf32>
    %16 = arith.subf %7, %15 : vector<16x64xf32>
    %17 = math.exp %16 : vector<16x64xf32>
    %18 = vector.extract_strided_slice %17 {offsets = [0, 0], sizes = [16, 16], strides = [1, 1]} : vector<16x64xf32> to vector<16x16xf32>
    %19 = vector.extract_strided_slice %17 {offsets = [0, 16], sizes = [16, 16], strides = [1, 1]} : vector<16x64xf32> to vector<16x16xf32>
    %20 = arith.addf %18, %19 : vector<16x16xf32>
    %21 = vector.extract_strided_slice %17 {offsets = [0, 32], sizes = [16, 16], strides = [1, 1]} : vector<16x64xf32> to vector<16x16xf32>
    %22 = arith.addf %20, %21 : vector<16x16xf32>
    %23 = vector.extract_strided_slice %17 {offsets = [0, 48], sizes = [16, 16], strides = [1, 1]} : vector<16x64xf32> to vector<16x16xf32>
    %24 = arith.addf %22, %23 : vector<16x16xf32>
    %25 = math.log %24 : vector<16x16xf32>
    %26 = arith.addf %14, %25 : vector<16x16xf32>
    %c0_i32 = arith.constant 0 : i32
    %27 = arith.cmpi slt, %arg0, %c0_i32 : i32
    %28 = arith.extui %27 : i1 to i32
    %c0_i32_5 = arith.constant 0 : i32
    %29 = arith.cmpi ne, %28, %c0_i32_5 : i32
    scf.if %29 {
      %33 = vector.shape_cast %26 : vector<16x16xf32> to vector<1x16x16xf32>
      %cst_8 = arith.constant dense<0.000000e+00> : vector<1xf32>
      %34 = vector.multi_reduction <add>, %33, %cst_8 [1, 2] : vector<1x16x16xf32> to vector<1xf32>
      %35 = vector.shape_cast %34 : vector<1xf32> to vector<1x1x1xf32>
      %36 = vector.extract %35[0, 0, 0] : f32 from vector<1x1x1xf32>
      %c0_9 = arith.constant 0 : index
      %c0_10 = arith.constant 0 : index
      %37 = memref.load %arg4[%c0_9, %c0_10] : memref<1x1xf32, #tpu.memory_space<smem>>
      memref.store %36, %arg4[%c0_9, %c0_10] : memref<1x1xf32, #tpu.memory_space<smem>>
    } else {
    }
    %c0_i32_6 = arith.constant 0 : i32
    %30 = arith.cmpi eq, %arg0, %c0_i32_6 : i32
    %31 = arith.extui %30 : i1 to i32
    %c0_i32_7 = arith.constant 0 : i32
    %32 = arith.cmpi ne, %31, %c0_i32_7 : i32
    scf.if %32 {
      %33 = tpu.iota {dimensions = array<i32: 0>} : vector<16x16xi32>
      %c16_i32 = arith.constant 16 : i32
      %34 = arith.muli %arg0, %c16_i32 : i32
      %35 = vector.broadcast %34 : i32 to vector<16x16xi32>
      %36 = arith.addi %33, %35 : vector<16x16xi32>
      %c12_i32 = arith.constant 12 : i32
      %37 = vector.broadcast %c12_i32 : i32 to vector<16x16xi32>
      %38 = arith.cmpi slt, %36, %37 : vector<16x16xi32>
      %cst_8 = arith.constant 0.000000e+00 : f32
      %39 = vector.broadcast %cst_8 : f32 to vector<16x16xf32>
      %40 = arith.select %38, %26, %39 : vector<16x16xi1>, vector<16x16xf32>
      %41 = vector.shape_cast %40 : vector<16x16xf32> to vector<1x16x16xf32>
      %cst_9 = arith.constant dense<0.000000e+00> : vector<1xf32>
      %42 = vector.multi_reduction <add>, %41, %cst_9 [1, 2] : vector<1x16x16xf32> to vector<1xf32>
      %43 = vector.shape_cast %42 : vector<1xf32> to vector<1x1x1xf32>
      %44 = vector.extract %43[0, 0, 0] : f32 from vector<1x1x1xf32>
      %c0_10 = arith.constant 0 : index
      %c0_11 = arith.constant 0 : index
      %45 = memref.load %arg4[%c0_10, %c0_11] : memref<1x1xf32, #tpu.memory_space<smem>>
      memref.store %44, %arg4[%c0_10, %c0_11] : memref<1x1xf32, #tpu.memory_space<smem>>
    } else {
    }
    return
  }
  func.func @transform_0(%arg0: i32) -> (i32, i32) {
    %c0_i32 = arith.constant 0 : i32
    %c0_i32_0 = arith.constant 0 : i32
    return %arg0, %c0_i32 : i32, i32
  }
  func.func @transform_1(%arg0: i32) -> (i32, i32) {
    %c0_i32 = arith.constant 0 : i32
    %c0_i32_0 = arith.constant 0 : i32
    %c0_i32_1 = arith.constant 0 : i32
    return %c0_i32, %c0_i32_0 : i32, i32
  }
  func.func @transform_2(%arg0: i32) -> (i32, i32) {
    %c0_i32 = arith.constant 0 : i32
    %c0_i32_0 = arith.constant 0 : i32
    %c0_i32_1 = arith.constant 0 : i32
    return %c0_i32, %c0_i32_0 : i32, i32
  }
  func.func @transform_3(%arg0: i32) -> (i32, i32) {
    %c0_i32 = arith.constant 0 : i32
    %c0_i32_0 = arith.constant 0 : i32
    return %arg0, %c0_i32 : i32, i32
  }
}

</mosaic_0001>

<bundles_post_ra>
// kernel: tpu_custom_call.1
= control target key start
LH: loop header
LB: loop body
LE: loop exit
PB: predicated region body
PF: predicated region fallthrough
CT: control target
= control target key end

     0   :  { %s562_s0 = inlined_call_operand.vmem [shape: f32[12,128], index: 0, kind: input, shape index: {}]   ;;  %s563_s1 = inlined_call_operand.vmem [shape: f32[256,64], index: 1, kind: input, shape index: {}]   ;;  %s564_s2 = inlined_call_operand.vmem [shape: f32[1,64], index: 2, kind: input, shape index: {}]   ;;  %s565_s3 = inlined_call_operand.hbm [shape: f32[1,1], index: 3, kind: output, shape index: {}]  }
   0x1   :  { %v35_v0 = vld [vmem:[%s563_s1 + $0x80] sm:$0xff]  ;;  %v36_v1 = vld [vmem:[%s563_s1 + $0x88] sm:$0xff]  ;;  %v37_v5 = vld [vmem:[%s563_s1 + $0x90] sm:$0xff] }
   0x2   :  { %v19_v2 = vld [vmem:[%s563_s1] sm:$0xff]  ;;  %v325_v3 = vpack.c.bf16 %v36_v1, %v35_v0  ;;  %v20_v4 = vld [vmem:[%s563_s1 + $0x8] sm:$0xff]  ;;  %v38_v6 = vld [vmem:[%s563_s1 + $0x98] sm:$0xff] }
   0x3   :  { %v327_v7 = vpack.c.bf16 %v20_v4, %v19_v2  ;;  %v329_v8 = vpack.c.bf16 %v38_v6, %v37_v5  ;;  %v21_v9 = vld [vmem:[%s563_s1 + $0x10] sm:$0xff]  ;;  %v22_v10 = vld [vmem:[%s563_s1 + $0x18] sm:$0xff]  ;;  %v39_v11 = vld [vmem:[%s563_s1 + $0xa0] sm:$0xff] }
   0x4   :  { %357 = vmatprep.subr.bf16.mxu1 %v325_v3  ;;  %326 = vmatprep.subr.bf16.mxu0 %v325_v3  ;;  %v40_v12 = vld [vmem:[%s563_s1 + $0xa8] sm:$0xff]  ;;  %v331_v13 = vpack.c.bf16 %v22_v10, %v21_v9  ;;  %v23_v15 = vld [vmem:[%s563_s1 + $0x20] sm:$0xff]  ;;  %v41_v17 = vld [vmem:[%s563_s1 + $0xb0] sm:$0xff] }
   0x5   :  { %365 = vmatpush3.bf16.msra.mxu1 %v327_v7  ;;  %328 = vmatpush3.bf16.msra.mxu0 %v327_v7  ;;  %v333_v14 = vpack.c.bf16 %v40_v12, %v39_v11  ;;  %v24_v16 = vld [vmem:[%s563_s1 + $0x28] sm:$0xff]  ;;  %v42_v18 = vld [vmem:[%s563_s1 + $0xb8] sm:$0xff]  ;;  %v25_v21 = vld [vmem:[%s563_s1 + $0x30] sm:$0xff] }
   0x6   :  { %358 = vmatprep.subr.bf16.mxu1 %v329_v8  ;;  %330 = vmatprep.subr.bf16.mxu0 %v329_v8  ;;  %v335_v19 = vpack.c.bf16 %v24_v16, %v23_v15  ;;  %v337_v20 = vpack.c.bf16 %v42_v18, %v41_v17  ;;  %v26_v22 = vld [vmem:[%s563_s1 + $0x38] sm:$0xff]  ;;  %v43_v23 = vld [vmem:[%s563_s1 + $0xc0] sm:$0xff]  ;;  %v44_v24 = vld [vmem:[%s563_s1 + $0xc8] sm:$0xff] }
   0x7   :  { %v16_v25 = vld [vmem:[%s562_s0 + $0x8] sm:$0xff]  ;;  %v15_v26 = vld [vmem:[%s562_s0] sm:$0xff] }
   0x8   :  { %127 = vmatprep.mubr.f32.mxu1 %v16_v25 }
   0x9   :  { %366 = vmatpush3.bf16.msra.mxu1 %v331_v13  ;;  %332 = vmatpush3.bf16.msra.mxu0 %v331_v13 }
   0xa   :  { %359 = vmatprep.subr.bf16.mxu1 %v333_v14  ;;  %334 = vmatprep.subr.bf16.mxu0 %v333_v14 }
   0xb   :  { %8 = vsyncpa [#allocation3], 0  ;;  %v339_v27 = vpack.c.bf16 %v26_v22, %v25_v21  ;;  %v341_v28 = vpack.c.bf16 %v44_v24, %v43_v23  ;;  %v27_v29 = vld [vmem:[%s563_s1 + $0x40] sm:$0xff]  ;;  %v28_v30 = vld [vmem:[%s563_s1 + $0x48] sm:$0xff]  ;;  %122 = vmatprep.mubr.f32.mxu0 %v15_v26  ;;  %v18_v50 = vmul.f32 %v16_v25, %v16_v25  ;;  %v17_v51 = vmul.f32 %v15_v26, %v15_v26  ;;  %s403_s27 = smov 112   ;;  %s404_s28 = smov 80  }
   0xc   :  { %v45_v31 = vld [vmem:[%s563_s1 + $0xd0] sm:$0xff]  ;;  %v46_v32 = vld [vmem:[%s563_s1 + $0xd8] sm:$0xff]  ;;  %v343_v33 = vpack.c.bf16 %v28_v30, %v27_v29  ;;  %v47_v37 = vld [vmem:[%s563_s1 + $0xe0] sm:$0xff]  ;;  %s406_s29 = smov 32   ;;  %s407_s30 = smov 48   ;;  %vm179_vm0 = vcmask 130048  }
   0xd   :  { %367 = vmatpush3.bf16.msra.mxu1 %v335_v19  ;;  %336 = vmatpush3.bf16.msra.mxu0 %v335_v19  ;;  %v345_v34 = vpack.c.bf16 %v46_v32, %v45_v31  ;;  %v29_v35 = vld [vmem:[%s563_s1 + $0x50] sm:$0xff]  ;;  %v30_v36 = vld [vmem:[%s563_s1 + $0x58] sm:$0xff]  ;;  %v48_v38 = vld [vmem:[%s563_s1 + $0xe8] sm:$0xff]  ;;  %vm182_vm1 = vcmask 261120   ;;  %vm185_vm2 = vcmask 392192   ;;  %s390_s6 = scalar_lea.hbm %s565_s3, 16 }
   0xe   :  { %360 = vmatprep.subr.bf16.mxu1 %v337_v20  ;;  %338 = vmatprep.subr.bf16.mxu0 %v337_v20  ;;  %v347_v39 = vpack.c.bf16 %v30_v36, %v29_v35  ;;  %v349_v40 = vpack.c.bf16 %v48_v38, %v47_v37  ;;  %v31_v41 = vld [vmem:[%s563_s1 + $0x60] sm:$0xff]  ;;  %v32_v42 = vld [vmem:[%s563_s1 + $0x68] sm:$0xff]  ;;  %v49_v43 = vld [vmem:[%s563_s1 + $0xf0] sm:$0xff]  ;;  %p391_p0 = scmp.ne.s32.totalorder %s565_s3, %s390_s6  ;;  %p394_p1 = scmp.lt.u32.totalorder %s390_s6, %s565_s3 }
   0xf   :  { %v50_v44 = vld [vmem:[%s563_s1 + $0xf8] sm:$0xff]  ;;  %v351_v45 = vpack.c.bf16 %v32_v42, %v31_v41  ;;  %v33_v47 = vld [vmem:[%s563_s1 + $0x70] sm:$0xff]  ;;  %v286_v54 = vld [vmem:[%s564_s2] ss:$0 sm:$0xff]  ;;  %s405_s2 = smov 16  }
  0x10   :  { %v353_v46 = vpack.c.bf16 %v50_v44, %v49_v43  ;;  %v34_v48 = vld [vmem:[%s563_s1 + $0x78] sm:$0xff]  ;;  %s402_s1 = smov 96   ;;  %p396_p2 = pnand %p394_p1, %p391_p0 }
  0x11   :  { %368 = vmatpush3.bf16.msra.mxu1 %v339_v27  ;;  %340 = vmatpush3.bf16.msra.mxu0 %v339_v27  ;;  %v355_v49 = vpack.c.bf16 %v34_v48, %v33_v47 }
  0x12   :  { %361 = vmatprep.subr.bf16.mxu1 %v341_v28  ;;  %342 = vmatprep.subr.bf16.mxu0 %v341_v28 }
  0x15   :  { %369 = vmatpush3.bf16.msra.mxu1 %v343_v33  ;;  %344 = vmatpush3.bf16.msra.mxu0 %v343_v33 }
  0x16   :  { %362 = vmatprep.subr.bf16.mxu1 %v345_v34  ;;  %346 = vmatprep.subr.bf16.mxu0 %v345_v34 }
  0x19   :  { %370 = vmatpush3.bf16.msra.mxu1 %v347_v39  ;;  %348 = vmatpush3.bf16.msra.mxu0 %v347_v39  ;;  %v248_v39 = vlaneseq }
  0x1a   :  { %363 = vmatprep.subr.bf16.mxu1 %v349_v40  ;;  %350 = vmatprep.subr.bf16.mxu0 %v349_v40 }
  0x1b   :  { %v249_v40 = vshrl.u32 %v248_v39, 7 }
  0x1d   :  { %371 = vmatpush3.bf16.msra.mxu1 %v351_v45  ;;  %352 = vmatpush3.bf16.msra.mxu0 %v351_v45  ;;  %v250_v41 = vadd.s32 8, %v249_v40 }
  0x1e   :  { %364 = vmatprep.subr.bf16.mxu1 %v353_v46  ;;  %354 = vmatprep.subr.bf16.mxu0 %v353_v46 }
  0x1f   :  { %vm256_vm3 = vcmp.lt.s32.totalorder %v250_v41, 12 }
  0x21   :  { %372 = vmatpush3.bf16.msra.mxu1 %v355_v49  ;;  %356 = vmatpush3.bf16.msra.mxu0 %v355_v49 }
  0x24   :  { %128 = vmatmul.mubr.f32.vlgmr.msra.gmra.mrb[0].mxu1 %v18_v50  ;;  %123 = vmatmul.mubr.f32.vlgmr.msra.gmra.mrb[0].mxu0 %v17_v51 }
  0xf7   :  { %v322_v52 = vpop.f32.mrb[0].mxu1  ;;  %v319_v53 = vpop.f32.mrb[0].mxu0 }
  0xf8   :  { %v323_v55 = vpop.f32.mrb[1].mxu1  ;;  %v320_v56 = vpop.f32.mrb[1].mxu0 }
  0xf9   :  { %v324_v57 = vadd.f32 %v323_v55, %v322_v52  ;;  %v321_v58 = vadd.f32 %v320_v56, %v319_v53 }
  0xfb   :  { %v130_v59 = vadd.f32 %v324_v57, %v286_v54  ;;  %v125_v60 = vadd.f32 %v321_v58, %v286_v54 }
  0xfd   :  { %145 = vrot.lane.b32.xlu1 %v130_v59, %s402_s1  ;;  %137 = vrot.lane.b32.xlu0 %v130_v59, %s403_s27 }
 0x101   :  { %143 = vrot.lane.b32.xlu1 %v125_v60, %s402_s1  ;;  %135 = vrot.lane.b32.xlu0 %v125_v60, %s403_s27 }
 0x105   :  { %151 = vrot.lane.b32.xlu1 %v125_v60, %s404_s28  ;;  %153 = vrot.lane.b32.xlu0 %v130_v59, %s404_s28 }
 0x16f   :  { %v146_v61 = vpop.permute.xlu1 %145  ;;  %v138_v62 = vpop.permute.xlu0 %137 }
 0x170   :  { %v142_v63 = vmax.f32 %v130_v59, %v138_v62 }
 0x172   :  { %v150_v4 = vmax.f32 %v142_v63, %v146_v61 }
 0x173   :  { %v144_v0 = vpop.permute.xlu1 %143  ;;  %v136_v1 = vpop.permute.xlu0 %135 }
 0x174   :  { %v141_v2 = vmax.f32 %v125_v60, %v136_v1 }
 0x176   :  { %v149_v3 = vmax.f32 %v141_v2, %v144_v0 }
 0x177   :  { %v152_v5 = vpop.permute.xlu1 %151  ;;  %v154_v6 = vpop.permute.xlu0 %153 }
 0x178   :  { %v157_v7 = vmax.f32 %v149_v3, %v152_v5  ;;  %v158_v8 = vmax.f32 %v150_v4, %v154_v6 }
 0x17a   :  { %161 = vrot.lane.b32.xlu1 %v157_v7, %s405_s2  ;;  %163 = vrot.lane.b32.xlu0 %v158_v8, %s405_s2 }
 0x17e   :  { %167 = vrot.lane.b32.xlu1 %v157_v7, %s406_s29  ;;  %169 = vrot.lane.b32.xlu0 %v158_v8, %s406_s29 }
 0x182   :  { %173 = vrot.lane.b32.xlu1 %v157_v7, %s407_s30  ;;  %175 = vrot.lane.b32.xlu0 %v158_v8, %s407_s30 }
 0x1ec   :  { %v162_v9 = vpop.permute.xlu1 %161  ;;  %v164_v10 = vpop.permute.xlu0 %163 }
 0x1ed   :  { %v180_v13 = vsel %vm179_vm0, %v157_v7, %v162_v9  ;;  %v181_v14 = vsel %vm179_vm0, %v158_v8, %v164_v10 }
 0x1f0   :  { %v168_v11 = vpop.permute.xlu1 %167  ;;  %v170_v12 = vpop.permute.xlu0 %169 }
 0x1f1   :  { %v183_v15 = vsel %vm182_vm1, %v180_v13, %v168_v11  ;;  %v184_v16 = vsel %vm182_vm1, %v181_v14, %v170_v12 }
 0x1f4   :  { %v174_v17 = vpop.permute.xlu1 %173  ;;  %v176_v18 = vpop.permute.xlu0 %175 }
 0x1f5   :  { %v186_v19 = vsel %vm185_vm2, %v183_v15, %v174_v17  ;;  %v187_v20 = vsel %vm185_vm2, %v184_v16, %v176_v18 }
 0x1f6   :  { %v188_v21 = vsub.f32 %v125_v60, %v186_v19  ;;  %v189_v22 = vsub.f32 %v130_v59, %v187_v20 }
 0x1f8   :  { %v190_v23 = vmul.f32 1.442695, %v188_v21  ;;  %v192_v24 = vmul.f32 1.442695, %v189_v22 }
 0x1fa   :  { %382 = vpow2.f32 %v190_v23 }
 0x1fb   :  { %384 = vpow2.f32 %v192_v24 }
 0x204   :  { %v383_v25 = vpop.eup %382 }
 0x205   :  { %v385_v26 = vpop.eup %384  ;;  %196 = vrot.lane.b32.xlu1 %v383_v25, %s403_s27 }
 0x206   :  { %198 = vrot.lane.b32.xlu0 %v385_v26, %s403_s27 }
 0x209   :  { %204 = vrot.lane.b32.xlu1 %v383_v25, %s402_s1 }
 0x20a   :  { %206 = vrot.lane.b32.xlu0 %v385_v26, %s402_s1 }
 0x20d   :  { %212 = vrot.lane.b32.xlu1 %v383_v25, %s404_s28 }
 0x20e   :  { %214 = vrot.lane.b32.xlu0 %v385_v26, %s404_s28 }
 0x277   :  { %v197_v27 = vpop.permute.xlu1 %196 }
 0x278   :  { %v199_v28 = vpop.permute.xlu0 %198  ;;  %v202_v30 = vadd.f32 %v383_v25, %v197_v27 }
 0x279   :  { %v203_v32 = vadd.f32 %v385_v26, %v199_v28 }
 0x27b   :  { %v205_v29 = vpop.permute.xlu1 %204 }
 0x27c   :  { %v207_v31 = vpop.permute.xlu0 %206  ;;  %v210_v33 = vadd.f32 %v205_v29, %v202_v30 }
 0x27d   :  { %v211_v34 = vadd.f32 %v207_v31, %v203_v32 }
 0x27f   :  { %v213_v35 = vpop.permute.xlu1 %212 }
 0x280   :  { %v218_v36 = vadd.f32 %v213_v35, %v210_v33  ;;  %v215_v37 = vpop.permute.xlu0 %214 }
 0x281   :  { %v219_v38 = vadd.f32 %v215_v37, %v211_v34 }
 0x282   :  { %386 = vlog2.f32 %v218_v36 }
 0x283   :  { %388 = vlog2.f32 %v219_v38 }
 0x28c   :  { %v387_v42 = vpop.eup %386 }
 0x28d   :  { %v389_v43 = vpop.eup %388  ;;  %v221_v44 = vmul.f32 0.6931472, %v387_v42 }
 0x28e   :  { %v223_v45 = vmul.f32 0.6931472, %v389_v43 }
 0x28f   :  { %v224_v46 = vadd.f32 %v221_v44, %v157_v7 }
 0x290   :  { %v225_v47 = vadd.f32 %v223_v45, %v158_v8 }
 0x291   :  { %v259_v48 = vsel %vm179_vm0, %v224_v46, 0.0 }
 0x292   :  { %v258_v49 = vsel %vm256_vm3, %v225_v47, 0.0 }
 0x293   :  { %v260_v50 = vsel %vm179_vm0, %v258_v49, 0.0 }
 0x294   :  { %v261_v51 = vadd.f32 %v260_v50, %v259_v48 }
 0x296   :  { %262 = vadd.xlane.f32.xlu0 %v261_v51 }
 0x323   :  { %v263_v52 = vpop.xlane.xlu0 %262 }
 0x324   :  { %v264_v53 = vrot.slane %v263_v52, 4 }
 0x326   :  { %v265_v54 = vadd.f32 %v264_v53, %v263_v52 }
 0x328   :  { %v266_v55 = vrot.slane %v265_v54, 2 }
 0x32a   :  { %v267_v56 = vadd.f32 %v266_v55, %v265_v54 }
 0x32c   :  { %v268_v57 = vrot.slane %v267_v56, 1 }
 0x32e   :  { %v269_v58 = vadd.f32 %v268_v57, %v267_v56 }
 0x330   :  { %373 = vpush %v269_v58 }
 0x361   :  { %s374_s0 = spop %373 }
 0x362   :  { %272 = sst [smem:[#allocation2]] %s374_s0 }
 0x363   :  { %399 = shalt.err (!%p396_p2)
}
 0x364   :  { %s408_s11 = smov [#allocation2]  }
 0x365   :  { %280 = dma.smem_to_hbm %s408_s11, 16, %s565_s3, [#allocation3]  }
 0x366   :  { %400 = dma.done.wait [#allocation3], 16  }
 0x367   :  { %401 = vsyncadd [#allocation3], 4294967280 }
 0x368   :  { %284 = sfence }
 0x369   :  { %285 = vsyncpa [#allocation3], 1 }

</bundles_post_ra>
